<compile_context>
chip_gen: v7x
topology: tpu7x:2x2x1
jax: 0.10.0
libtpu: 0.0.40
codegen_flags: <defaults>
</compile_context>

<pallas_src>
import jax
import jax.numpy as jnp
from jax import lax
from jax.experimental import pallas as pl
from jax.experimental.pallas import tpu as pltpu


def _round_up(x, m):
    return -(-x // m) * m


# ----------------------------- fused Pallas kernel ----------------------------- #

def _make_fused_kernel(b_real, matmul_dtype):
    """Build the fused BiLSTM + BatchNorm kernel.

    Ref shapes (T = seq len, Bp = padded batch, D = input dim, H = hidden, G = 4H):
      x_ref     : (T*Bp, D)    time-major, row (t*Bp + b)
      wih_ref   : (2, D, G)    packed per-direction input weights, columns i|f|g|o
      whh_ref   : (2, H, G)    packed per-direction recurrent weights
      b_ref     : (2, 1, G)    packed bias (b_ih + b_hh)
      gamma_ref : (1, 1, 2H)   BN weight
      beta_ref  : (1, 1, 2H)   BN bias
      out_ref   : (B, T, 2H)   final normalized output (batch-first, fwd|bwd)
      scratch   : xw fwd/bwd (T*Bp, G), y fwd/bwd (T, Bp, H), h/c (2, Bp, H)
    """

    def kernel(x_ref, wih_ref, whh_ref, b_ref, gamma_ref, beta_ref, out_ref,
               xwf_scr, xwb_scr, yf_scr, yb_scr, h_scr, c_scr):
        T, Bp, H = yf_scr.shape
        G = 4 * H

        # ---- hoisted input projection: one wide GEMM per direction, bias folded.
        x2d = x_ref[...].astype(matmul_dtype)                       # (T*Bp, D)
        xwf_scr[...] = jnp.dot(x2d, wih_ref[0].astype(matmul_dtype),
                               preferred_element_type=jnp.float32) + b_ref[0]
        xwb_scr[...] = jnp.dot(x2d, wih_ref[1].astype(matmul_dtype),
                               preferred_element_type=jnp.float32) + b_ref[1]

        h_scr[...] = jnp.zeros_like(h_scr)
        c_scr[...] = jnp.zeros_like(c_scr)

        # Recurrent weights loaded (and optionally cast) once, outside the loop.
        whh = (whh_ref[0].astype(matmul_dtype), whh_ref[1].astype(matmul_dtype))

        def dir_step(d, xw_scr, y_scr, t):
            row0 = pl.multiple_of(t * Bp, Bp)
            xw_t = xw_scr[pl.ds(row0, Bp), :]                       # (Bp, G)
            z = xw_t + jnp.dot(h_scr[d].astype(matmul_dtype), whh[d],
                               preferred_element_type=jnp.float32)  # (Bp, G)
            i_g = jax.nn.sigmoid(z[:, 0 * H:1 * H])
            f_g = jax.nn.sigmoid(z[:, 1 * H:2 * H])
            g_g = jnp.tanh(z[:, 2 * H:3 * H])
            o_g = jax.nn.sigmoid(z[:, 3 * H:4 * H])
            c_new = f_g * c_scr[d] + i_g * g_g
            h_new = o_g * jnp.tanh(c_new)
            h_scr[d] = h_new
            c_scr[d] = c_new
            y_scr[t] = h_new                                        # (Bp, H)

        # Interleave the two independent directions in one loop (hides matmul
        # latency on single-TensorCore chips).
        # TODO(synk): on v7x, split directions across the 2 TensorCores instead.
        @pl.loop(0, T)
        def _(t):
            dir_step(0, xwf_scr, yf_scr, t)            # forward:  t = 0 .. T-1
            dir_step(1, xwb_scr, yb_scr, T - 1 - t)    # backward: t = T-1 .. 0

        # ---- fused BatchNorm1d: training-mode batch stats (biased variance),
        #      one pass (sum + sum-of-squares), per-channel over batch*time.
        inv_n = 1.0 / float(T * b_real)
        gamma = gamma_ref[...]                                      # (1, 1, 2H)
        beta = beta_ref[...]

        def bn_normalize(y_scr, g_half, b_half):
            y = y_scr[...][:, :b_real, :]                           # (T, B, H)
            s1 = jnp.sum(y, axis=(0, 1), keepdims=True)
            s2 = jnp.sum(y * y, axis=(0, 1), keepdims=True)
            mean = s1 * inv_n
            var = s2 * inv_n - mean * mean
            scale = lax.rsqrt(var + 1e-5) * g_half
            return y * scale + (b_half - mean * scale)              # (T, B, H)

        yn_f = bn_normalize(yf_scr, gamma[:, :, 0:H], beta[:, :, 0:H])
        yn_b = bn_normalize(yb_scr, gamma[:, :, H:2 * H], beta[:, :, H:2 * H])

        # Write the batch-first output with fully static indexing (B is small
        # and static); forward half -> [:H], backward half -> [H:].
        for b in range(b_real):
            out_ref[b, :, 0:H] = yn_f[:, b, :].astype(out_ref.dtype)
            out_ref[b, :, H:2 * H] = yn_b[:, b, :].astype(out_ref.dtype)
        # TODO(synk): BatchNorm running_mean / running_var updates are training-
        # only side effects; they do not affect this forward output.

    return kernel


# --------------------------------- JAX wrapper --------------------------------- #

def lstm_block_forward(x, params, matmul_dtype=jnp.float32):
    """x: (B, T, D_in) float32 -> (B, T, 2*H) float32 (batch_first=True).

    Set matmul_dtype=jnp.bfloat16 on v6e/v7x for ~2x MXU throughput (h/c state
    and accumulation stay f32); kept f32 here for exact parity with the reference.
    """
    B, T, D = x.shape
    H = params["w_hh"].shape[1]          # (2, H, 4H)
    G = 4 * H

    # Pad batch up to a sublane multiple so MXU rows are reasonably utilized.
    Bp = max(8, _round_up(B, 8))
    x_p = x.astype(jnp.float32)
    if Bp != B:
        x_p = jnp.pad(x_p, ((0, Bp - B), (0, 0), (0, 0)))
    # Time-major, flattened so the per-step slice [t*Bp : (t+1)*Bp] is contiguous.
    # TODO(synk): at production T/B, stream T-chunks from HBM (pl.ANY + manual
    # double-buffered DMA) and fold this reorder into the DMA index_map.
    x_tm = jnp.transpose(x_p, (1, 0, 2)).reshape(T * Bp, D)

    kernel = _make_fused_kernel(b_real=B, matmul_dtype=matmul_dtype)
    vmem = lambda: pl.BlockSpec(memory_space=pltpu.MemorySpace.VMEM)

    scratch_shapes = [
        pltpu.VMEM((T * Bp, G), jnp.float32),     # xW + b, forward
        pltpu.VMEM((T * Bp, G), jnp.float32),     # xW + b, backward
        pltpu.VMEM((T, Bp, H), jnp.float32),      # raw hidden states, forward
        pltpu.VMEM((T, Bp, H), jnp.float32),      # raw hidden states, backward
        pltpu.VMEM((2, Bp, H), jnp.float32),      # h state (per direction)
        pltpu.VMEM((2, Bp, H), jnp.float32),      # c state (per direction)
    ]

    # Explicit VMEM budget (v7x physical VMEM is only 64 MiB; scoped default 32).
    est_bytes = 4 * (
        T * Bp * D                                # x
        + 2 * D * G + 2 * H * G + 2 * G + 4 * H   # weights / bias / gamma / beta
        + B * T * 2 * H                           # output
        + 2 * T * Bp * G + 2 * T * Bp * H + 4 * Bp * H   # scratch
    )
    vmem_limit = int(min(max(4 * est_bytes, 8 << 20), 32 << 20))

    out = pl.pallas_call(
        kernel,
        out_shape=jax.ShapeDtypeStruct((B, T, 2 * H), jnp.float32),
        in_specs=[vmem() for _ in range(6)],
        out_specs=vmem(),
        scratch_shapes=scratch_shapes,
        compiler_params=pltpu.CompilerParams(vmem_limit_bytes=vmem_limit),
    )(x_tm, params["w_ih"], params["w_hh"], params["b"],
      params["gamma"].reshape(1, 1, 2 * H), params["beta"].reshape(1, 1, 2 * H))
    return out


# --------------------------- deterministic parameters --------------------------- #

def init_params(key, in_dim, hidden):
    """PyTorch-style init: LSTM U(-1/sqrt(H), 1/sqrt(H)); BN gamma=1, beta=0."""
    bound = 1.0 / float(hidden) ** 0.5
    keys = jax.random.split(key, 8)

    def u(k, shape):
        return jax.random.uniform(k, shape, jnp.float32, -bound, bound)

    # PyTorch layout: weight_ih (4H, D), weight_hh (4H, H), gate order (i, f, g, o).
    w_ih = jnp.stack([u(keys[0], (4 * hidden, in_dim)),
                      u(keys[1], (4 * hidden, in_dim))])            # (2, 4H, D)
    w_hh = jnp.stack([u(keys[2], (4 * hidden, hidden)),
                      u(keys[3], (4 * hidden, hidden))])            # (2, 4H, H)
    b_ih = jnp.stack([u(keys[4], (4 * hidden,)), u(keys[5], (4 * hidden,))])
    b_hh = jnp.stack([u(keys[6], (4 * hidden,)), u(keys[7], (4 * hidden,))])

    # Pack for right-multiplication: x(B,D) @ W(D,4H); columns ordered i|f|g|o.
    return dict(
        w_ih=jnp.transpose(w_ih, (0, 2, 1)),                        # (2, D, 4H)
        w_hh=jnp.transpose(w_hh, (0, 2, 1)),                        # (2, H, 4H)
        b=(b_ih + b_hh).reshape(2, 1, 4 * hidden),                  # (2, 1, 4H)
        gamma=jnp.ones((2 * hidden,), jnp.float32),
        beta=jnp.zeros((2 * hidden,), jnp.float32),
    )


# ------------------------------ pure-JAX reference ------------------------------ #

def reference_forward(x, params):
    B, T, D = x.shape
    H = params["w_hh"].shape[1]

    def run_dir(d, xs):
        wih, whh, b = params["w_ih"][d], params["w_hh"][d], params["b"][d]

        def step(carry, x_t):
            h, c = carry
            z = x_t @ wih + h @ whh + b
            i_g = jax.nn.sigmoid(z[:, 0 * H:1 * H])
            f_g = jax.nn.sigmoid(z[:, 1 * H:2 * H])
            g_g = jnp.tanh(z[:, 2 * H:3 * H])
            o_g = jax.nn.sigmoid(z[:, 3 * H:4 * H])
            c = f_g * c + i_g * g_g
            h = o_g * jnp.tanh(c)
            return (h, c), h

        init = (jnp.zeros((B, H), jnp.float32), jnp.zeros((B, H), jnp.float32))
        _, hs = lax.scan(step, init, xs)
        return hs

    x_tm = jnp.transpose(x, (1, 0, 2)).astype(jnp.float32)
    fwd = run_dir(0, x_tm)
    bwd = run_dir(1, x_tm[::-1])[::-1]
    y = jnp.transpose(jnp.concatenate([fwd, bwd], axis=-1), (1, 0, 2))  # (B,T,2H)

    mean = jnp.mean(y, axis=(0, 1), keepdims=True)
    var = jnp.mean((y - mean) ** 2, axis=(0, 1), keepdims=True)
    return (y - mean) / jnp.sqrt(var + 1e-5) * params["gamma"] + params["beta"]


# -------------------------------------- main ------------------------------------- #

if __name__ == "__main__":
    B, T, D_IN, HIDDEN = 2, 8, 16, 32

    key = jax.random.PRNGKey(0)
    kx, kp = jax.random.split(key)
    x = jax.random.normal(kx, (B, T, D_IN), jnp.float32)
    params = init_params(kp, D_IN, HIDDEN)

    out = jax.jit(lstm_block_forward)(x, params)
    out = jax.block_until_ready(out)

    ref = reference_forward(x, params)
    assert out.shape == (B, T, 2 * HIDDEN), out.shape
    err = float(jnp.max(jnp.abs(out - ref)))
    assert err < 1e-3, err

    print("KERNEL_OK")
</pallas_src>

<mosaic_0001>
module attributes {stable_mosaic.version = 11 : i64} {
  func.func @kernel(%arg0: memref<64x16xf32, #tpu.memory_space<vmem>>, %arg1: memref<2x16x128xf32, #tpu.memory_space<vmem>>, %arg2: memref<2x32x128xf32, #tpu.memory_space<vmem>>, %arg3: memref<2x1x128xf32, #tpu.memory_space<vmem>>, %arg4: memref<1x1x64xf32, #tpu.memory_space<vmem>>, %arg5: memref<1x1x64xf32, #tpu.memory_space<vmem>>, %arg6: memref<2x8x64xf32, #tpu.memory_space<vmem>>, %arg7: memref<64x128xf32, #tpu.memory_space<vmem>>, %arg8: memref<64x128xf32, #tpu.memory_space<vmem>>, %arg9: memref<8x8x32xf32, #tpu.memory_space<vmem>>, %arg10: memref<8x8x32xf32, #tpu.memory_space<vmem>>, %arg11: memref<2x8x32xf32, #tpu.memory_space<vmem>>, %arg12: memref<2x8x32xf32, #tpu.memory_space<vmem>>) attributes {dimension_semantics = [], scalar_prefetch = 0 : i64, scratch_operands = 6 : i64, tpu.core_type = #tpu.core_type<tc>} {
    %c0 = arith.constant 0 : index
    %c0_0 = arith.constant 0 : index
    %0 = vector.load %arg0[%c0, %c0_0] : memref<64x16xf32, #tpu.memory_space<vmem>>, vector<64x16xf32>
    %c0_1 = arith.constant 0 : index
    %c0_2 = arith.constant 0 : index
    %c0_3 = arith.constant 0 : index
    %1 = vector.load %arg1[%c0_1, %c0_2, %c0_3] : memref<2x16x128xf32, #tpu.memory_space<vmem>>, vector<1x16x128xf32>
    %2 = vector.shape_cast %1 : vector<1x16x128xf32> to vector<16x128xf32>
    %cst = arith.constant dense<0.000000e+00> : vector<64x128xf32>
    %3 = tpu.matmul %0, %2, %cst {dimension_numbers = #tpu.dot_dimension_numbers<[1], [0], [0], [1], [0, 0, 1, 1], [], []>} : vector<64x16xf32>, vector<16x128xf32>, vector<64x128xf32> -> vector<64x128xf32>
    %c0_4 = arith.constant 0 : index
    %c0_5 = arith.constant 0 : index
    %c0_6 = arith.constant 0 : index
    %4 = vector.load %arg3[%c0_4, %c0_5, %c0_6] : memref<2x1x128xf32, #tpu.memory_space<vmem>>, vector<1x1x128xf32>
    %5 = vector.shape_cast %4 : vector<1x1x128xf32> to vector<1x128xf32>
    %6 = vector.broadcast %5 : vector<1x128xf32> to vector<64x128xf32>
    %7 = arith.addf %3, %6 : vector<64x128xf32>
    %c0_7 = arith.constant 0 : index
    %c0_8 = arith.constant 0 : index
    %8 = vector.load %arg7[%c0_7, %c0_8] : memref<64x128xf32, #tpu.memory_space<vmem>>, vector<64x128xf32>
    tpu.vector_store %arg7[%c0_7, %c0_8], %7 {strides = array<i32>} : memref<64x128xf32, #tpu.memory_space<vmem>>, vector<64x128xf32>,
    %c1 = arith.constant 1 : index
    %c0_9 = arith.constant 0 : index
    %c0_10 = arith.constant 0 : index
    %9 = vector.load %arg1[%c1, %c0_9, %c0_10] : memref<2x16x128xf32, #tpu.memory_space<vmem>>, vector<1x16x128xf32>
    %10 = vector.shape_cast %9 : vector<1x16x128xf32> to vector<16x128xf32>
    %cst_11 = arith.constant dense<0.000000e+00> : vector<64x128xf32>
    %11 = tpu.matmul %0, %10, %cst_11 {dimension_numbers = #tpu.dot_dimension_numbers<[1], [0], [0], [1], [0, 0, 1, 1], [], []>} : vector<64x16xf32>, vector<16x128xf32>, vector<64x128xf32> -> vector<64x128xf32>
    %c1_12 = arith.constant 1 : index
    %c0_13 = arith.constant 0 : index
    %c0_14 = arith.constant 0 : index
    %12 = vector.load %arg3[%c1_12, %c0_13, %c0_14] : memref<2x1x128xf32, #tpu.memory_space<vmem>>, vector<1x1x128xf32>
    %13 = vector.shape_cast %12 : vector<1x1x128xf32> to vector<1x128xf32>
    %14 = vector.broadcast %13 : vector<1x128xf32> to vector<64x128xf32>
    %15 = arith.addf %11, %14 : vector<64x128xf32>
    %c0_15 = arith.constant 0 : index
    %c0_16 = arith.constant 0 : index
    %16 = vector.load %arg8[%c0_15, %c0_16] : memref<64x128xf32, #tpu.memory_space<vmem>>, vector<64x128xf32>
    tpu.vector_store %arg8[%c0_15, %c0_16], %15 {strides = array<i32>} : memref<64x128xf32, #tpu.memory_space<vmem>>, vector<64x128xf32>,
    %cst_17 = arith.constant 0.000000e+00 : f32
    %17 = vector.broadcast %cst_17 : f32 to vector<2x8x32xf32>
    %c0_18 = arith.constant 0 : index
    %c0_19 = arith.constant 0 : index
    %c0_20 = arith.constant 0 : index
    %18 = vector.load %arg11[%c0_18, %c0_19, %c0_20] : memref<2x8x32xf32, #tpu.memory_space<vmem>>, vector<2x8x32xf32>
    tpu.vector_store %arg11[%c0_18, %c0_19, %c0_20], %17 {strides = array<i32>} : memref<2x8x32xf32, #tpu.memory_space<vmem>>, vector<2x8x32xf32>,
    %cst_21 = arith.constant 0.000000e+00 : f32
    %19 = vector.broadcast %cst_21 : f32 to vector<2x8x32xf32>
    %c0_22 = arith.constant 0 : index
    %c0_23 = arith.constant 0 : index
    %c0_24 = arith.constant 0 : index
    %20 = vector.load %arg12[%c0_22, %c0_23, %c0_24] : memref<2x8x32xf32, #tpu.memory_space<vmem>>, vector<2x8x32xf32>
    tpu.vector_store %arg12[%c0_22, %c0_23, %c0_24], %19 {strides = array<i32>} : memref<2x8x32xf32, #tpu.memory_space<vmem>>, vector<2x8x32xf32>,
    %c0_25 = arith.constant 0 : index
    %c0_26 = arith.constant 0 : index
    %c0_27 = arith.constant 0 : index
    %21 = vector.load %arg2[%c0_25, %c0_26, %c0_27] : memref<2x32x128xf32, #tpu.memory_space<vmem>>, vector<1x32x128xf32>
    %22 = vector.shape_cast %21 : vector<1x32x128xf32> to vector<32x128xf32>
    %c1_28 = arith.constant 1 : index
    %c0_29 = arith.constant 0 : index
    %c0_30 = arith.constant 0 : index
    %23 = vector.load %arg2[%c1_28, %c0_29, %c0_30] : memref<2x32x128xf32, #tpu.memory_space<vmem>>, vector<1x32x128xf32>
    %24 = vector.shape_cast %23 : vector<1x32x128xf32> to vector<32x128xf32>
    %c0_i32 = arith.constant 0 : i32
    %c8_i32 = arith.constant 8 : i32
    %25 = arith.addi %c0_i32, %c8_i32 : i32
    %c1_i32 = arith.constant 1 : i32
    scf.for %arg13 = %c0_i32 to %25 step %c1_i32  : i32 {
      %c1_i32_65 = arith.constant 1 : i32
      %98 = arith.muli %arg13, %c1_i32_65 : i32
      %c0_i32_66 = arith.constant 0 : i32
      %99 = arith.addi %c0_i32_66, %98 : i32
      %c8_i32_67 = arith.constant 8 : i32
      %100 = arith.muli %99, %c8_i32_67 : i32
      %101 = tpu.assume_multiple %100, 8 : i32
      %102 = arith.index_cast %101 : i32 to index
      %c0_68 = arith.constant 0 : index
      %103 = vector.load %arg7[%102, %c0_68] : memref<64x128xf32, #tpu.memory_space<vmem>>, vector<8x128xf32>
      %c0_69 = arith.constant 0 : index
      %c0_70 = arith.constant 0 : index
      %c0_71 = arith.constant 0 : index
      %104 = vector.load %arg11[%c0_69, %c0_70, %c0_71] : memref<2x8x32xf32, #tpu.memory_space<vmem>>, vector<1x8x32xf32>
      %105 = vector.shape_cast %104 : vector<1x8x32xf32> to vector<8x32xf32>
      %cst_72 = arith.constant dense<0.000000e+00> : vector<8x128xf32>
      %106 = tpu.matmul %105, %22, %cst_72 {dimension_numbers = #tpu.dot_dimension_numbers<[1], [0], [0], [1], [0, 0, 1, 1], [], []>} : vector<8x32xf32>, vector<32x128xf32>, vector<8x128xf32> -> vector<8x128xf32>
      %107 = arith.addf %103, %106 : vector<8x128xf32>
      %108 = vector.extract_strided_slice %107 {offsets = [0, 0], sizes = [8, 32], strides = [1, 1]} : vector<8x128xf32> to vector<8x32xf32>
      %109 = arith.negf %108 : vector<8x32xf32>
      %110 = math.exp %109 : vector<8x32xf32>
      %cst_73 = arith.constant 1.000000e+00 : f32
      %111 = vector.broadcast %cst_73 : f32 to vector<8x32xf32>
      %112 = arith.addf %111, %110 : vector<8x32xf32>
      %113 = arith.divf %111, %112 : vector<8x32xf32>
      %114 = vector.extract_strided_slice %107 {offsets = [0, 32], sizes = [8, 32], strides = [1, 1]} : vector<8x128xf32> to vector<8x32xf32>
      %115 = arith.negf %114 : vector<8x32xf32>
      %116 = math.exp %115 : vector<8x32xf32>
      %cst_74 = arith.constant 1.000000e+00 : f32
      %117 = vector.broadcast %cst_74 : f32 to vector<8x32xf32>
      %118 = arith.addf %117, %116 : vector<8x32xf32>
      %119 = arith.divf %117, %118 : vector<8x32xf32>
      %120 = vector.extract_strided_slice %107 {offsets = [0, 64], sizes = [8, 32], strides = [1, 1]} : vector<8x128xf32> to vector<8x32xf32>
      %121 = math.tanh %120 : vector<8x32xf32>
      %122 = vector.extract_strided_slice %107 {offsets = [0, 96], sizes = [8, 32], strides = [1, 1]} : vector<8x128xf32> to vector<8x32xf32>
      %123 = arith.negf %122 : vector<8x32xf32>
      %124 = math.exp %123 : vector<8x32xf32>
      %cst_75 = arith.constant 1.000000e+00 : f32
      %125 = vector.broadcast %cst_75 : f32 to vector<8x32xf32>
      %126 = arith.addf %125, %124 : vector<8x32xf32>
      %127 = arith.divf %125, %126 : vector<8x32xf32>
      %c0_76 = arith.constant 0 : index
      %c0_77 = arith.constant 0 : index
      %c0_78 = arith.constant 0 : index
      %128 = vector.load %arg12[%c0_76, %c0_77, %c0_78] : memref<2x8x32xf32, #tpu.memory_space<vmem>>, vector<1x8x32xf32>
      %129 = vector.shape_cast %128 : vector<1x8x32xf32> to vector<8x32xf32>
      %130 = arith.mulf %119, %129 : vector<8x32xf32>
      %131 = arith.mulf %113, %121 : vector<8x32xf32>
      %132 = arith.addf %130, %131 : vector<8x32xf32>
      %133 = math.tanh %132 : vector<8x32xf32>
      %134 = arith.mulf %127, %133 : vector<8x32xf32>
      %c0_79 = arith.constant 0 : index
      %c0_80 = arith.constant 0 : index
      %c0_81 = arith.constant 0 : index
      %135 = vector.load %arg11[%c0_79, %c0_80, %c0_81] : memref<2x8x32xf32, #tpu.memory_space<vmem>>, vector<1x8x32xf32>
      %136 = vector.shape_cast %135 : vector<1x8x32xf32> to vector<8x32xf32>
      %137 = vector.shape_cast %134 : vector<8x32xf32> to vector<1x8x32xf32>
      tpu.vector_store %arg11[%c0_79, %c0_80, %c0_81], %137 {strides = array<i32>} : memref<2x8x32xf32, #tpu.memory_space<vmem>>, vector<1x8x32xf32>,
      %c0_82 = arith.constant 0 : index
      %c0_83 = arith.constant 0 : index
      %c0_84 = arith.constant 0 : index
      %138 = vector.load %arg12[%c0_82, %c0_83, %c0_84] : memref<2x8x32xf32, #tpu.memory_space<vmem>>, vector<1x8x32xf32>
      %139 = vector.shape_cast %138 : vector<1x8x32xf32> to vector<8x32xf32>
      %140 = vector.shape_cast %132 : vector<8x32xf32> to vector<1x8x32xf32>
      tpu.vector_store %arg12[%c0_82, %c0_83, %c0_84], %140 {strides = array<i32>} : memref<2x8x32xf32, #tpu.memory_space<vmem>>, vector<1x8x32xf32>,
      %141 = arith.index_cast %99 : i32 to index
      %c0_85 = arith.constant 0 : index
      %c0_86 = arith.constant 0 : index
      %142 = vector.load %arg9[%141, %c0_85, %c0_86] : memref<8x8x32xf32, #tpu.memory_space<vmem>>, vector<1x8x32xf32>
      %143 = vector.shape_cast %142 : vector<1x8x32xf32> to vector<8x32xf32>
      %144 = vector.shape_cast %134 : vector<8x32xf32> to vector<1x8x32xf32>
      tpu.vector_store %arg9[%141, %c0_85, %c0_86], %144 {strides = array<i32>} : memref<8x8x32xf32, #tpu.memory_space<vmem>>, vector<1x8x32xf32>,
      %c7_i32 = arith.constant 7 : i32
      %145 = arith.subi %c7_i32, %99 : i32
      %c8_i32_87 = arith.constant 8 : i32
      %146 = arith.muli %145, %c8_i32_87 : i32
      %147 = tpu.assume_multiple %146, 8 : i32
      %148 = arith.index_cast %147 : i32 to index
      %c0_88 = arith.constant 0 : index
      %149 = vector.load %arg8[%148, %c0_88] : memref<64x128xf32, #tpu.memory_space<vmem>>, vector<8x128xf32>
      %c1_89 = arith.constant 1 : index
      %c0_90 = arith.constant 0 : index
      %c0_91 = arith.constant 0 : index
      %150 = vector.load %arg11[%c1_89, %c0_90, %c0_91] : memref<2x8x32xf32, #tpu.memory_space<vmem>>, vector<1x8x32xf32>
      %151 = vector.shape_cast %150 : vector<1x8x32xf32> to vector<8x32xf32>
      %cst_92 = arith.constant dense<0.000000e+00> : vector<8x128xf32>
      %152 = tpu.matmul %151, %24, %cst_92 {dimension_numbers = #tpu.dot_dimension_numbers<[1], [0], [0], [1], [0, 0, 1, 1], [], []>} : vector<8x32xf32>, vector<32x128xf32>, vector<8x128xf32> -> vector<8x128xf32>
      %153 = arith.addf %149, %152 : vector<8x128xf32>
      %154 = vector.extract_strided_slice %153 {offsets = [0, 0], sizes = [8, 32], strides = [1, 1]} : vector<8x128xf32> to vector<8x32xf32>
      %155 = arith.negf %154 : vector<8x32xf32>
      %156 = math.exp %155 : vector<8x32xf32>
      %cst_93 = arith.constant 1.000000e+00 : f32
      %157 = vector.broadcast %cst_93 : f32 to vector<8x32xf32>
      %158 = arith.addf %157, %156 : vector<8x32xf32>
      %159 = arith.divf %157, %158 : vector<8x32xf32>
      %160 = vector.extract_strided_slice %153 {offsets = [0, 32], sizes = [8, 32], strides = [1, 1]} : vector<8x128xf32> to vector<8x32xf32>
      %161 = arith.negf %160 : vector<8x32xf32>
      %162 = math.exp %161 : vector<8x32xf32>
      %cst_94 = arith.constant 1.000000e+00 : f32
      %163 = vector.broadcast %cst_94 : f32 to vector<8x32xf32>
      %164 = arith.addf %163, %162 : vector<8x32xf32>
      %165 = arith.divf %163, %164 : vector<8x32xf32>
      %166 = vector.extract_strided_slice %153 {offsets = [0, 64], sizes = [8, 32], strides = [1, 1]} : vector<8x128xf32> to vector<8x32xf32>
      %167 = math.tanh %166 : vector<8x32xf32>
      %168 = vector.extract_strided_slice %153 {offsets = [0, 96], sizes = [8, 32], strides = [1, 1]} : vector<8x128xf32> to vector<8x32xf32>
      %169 = arith.negf %168 : vector<8x32xf32>
      %170 = math.exp %169 : vector<8x32xf32>
      %cst_95 = arith.constant 1.000000e+00 : f32
      %171 = vector.broadcast %cst_95 : f32 to vector<8x32xf32>
      %172 = arith.addf %171, %170 : vector<8x32xf32>
      %173 = arith.divf %171, %172 : vector<8x32xf32>
      %c1_96 = arith.constant 1 : index
      %c0_97 = arith.constant 0 : index
      %c0_98 = arith.constant 0 : index
      %174 = vector.load %arg12[%c1_96, %c0_97, %c0_98] : memref<2x8x32xf32, #tpu.memory_space<vmem>>, vector<1x8x32xf32>
      %175 = vector.shape_cast %174 : vector<1x8x32xf32> to vector<8x32xf32>
      %176 = arith.mulf %165, %175 : vector<8x32xf32>
      %177 = arith.mulf %159, %167 : vector<8x32xf32>
      %178 = arith.addf %176, %177 : vector<8x32xf32>
      %179 = math.tanh %178 : vector<8x32xf32>
      %180 = arith.mulf %173, %179 : vector<8x32xf32>
      %c1_99 = arith.constant 1 : index
      %c0_100 = arith.constant 0 : index
      %c0_101 = arith.constant 0 : index
      %181 = vector.load %arg11[%c1_99, %c0_100, %c0_101] : memref<2x8x32xf32, #tpu.memory_space<vmem>>, vector<1x8x32xf32>
      %182 = vector.shape_cast %181 : vector<1x8x32xf32> to vector<8x32xf32>
      %183 = vector.shape_cast %180 : vector<8x32xf32> to vector<1x8x32xf32>
      tpu.vector_store %arg11[%c1_99, %c0_100, %c0_101], %183 {strides = array<i32>} : memref<2x8x32xf32, #tpu.memory_space<vmem>>, vector<1x8x32xf32>,
      %c1_102 = arith.constant 1 : index
      %c0_103 = arith.constant 0 : index
      %c0_104 = arith.constant 0 : index
      %184 = vector.load %arg12[%c1_102, %c0_103, %c0_104] : memref<2x8x32xf32, #tpu.memory_space<vmem>>, vector<1x8x32xf32>
      %185 = vector.shape_cast %184 : vector<1x8x32xf32> to vector<8x32xf32>
      %186 = vector.shape_cast %178 : vector<8x32xf32> to vector<1x8x32xf32>
      tpu.vector_store %arg12[%c1_102, %c0_103, %c0_104], %186 {strides = array<i32>} : memref<2x8x32xf32, #tpu.memory_space<vmem>>, vector<1x8x32xf32>,
      %187 = arith.index_cast %145 : i32 to index
      %c0_105 = arith.constant 0 : index
      %c0_106 = arith.constant 0 : index
      %188 = vector.load %arg10[%187, %c0_105, %c0_106] : memref<8x8x32xf32, #tpu.memory_space<vmem>>, vector<1x8x32xf32>
      %189 = vector.shape_cast %188 : vector<1x8x32xf32> to vector<8x32xf32>
      %190 = vector.shape_cast %180 : vector<8x32xf32> to vector<1x8x32xf32>
      tpu.vector_store %arg10[%187, %c0_105, %c0_106], %190 {strides = array<i32>} : memref<8x8x32xf32, #tpu.memory_space<vmem>>, vector<1x8x32xf32>,
    }
    %c8_i32_31 = arith.constant 8 : i32
    %c0_32 = arith.constant 0 : index
    %c0_33 = arith.constant 0 : index
    %c0_34 = arith.constant 0 : index
    %26 = vector.load %arg4[%c0_32, %c0_33, %c0_34] : memref<1x1x64xf32, #tpu.memory_space<vmem>>, vector<1x1x64xf32>
    %c0_35 = arith.constant 0 : index
    %c0_36 = arith.constant 0 : index
    %c0_37 = arith.constant 0 : index
    %27 = vector.load %arg5[%c0_35, %c0_36, %c0_37] : memref<1x1x64xf32, #tpu.memory_space<vmem>>, vector<1x1x64xf32>
    %28 = vector.extract_strided_slice %26 {offsets = [0, 0, 0], sizes = [1, 1, 32], strides = [1, 1, 1]} : vector<1x1x64xf32> to vector<1x1x32xf32>
    %29 = vector.extract_strided_slice %27 {offsets = [0, 0, 0], sizes = [1, 1, 32], strides = [1, 1, 1]} : vector<1x1x64xf32> to vector<1x1x32xf32>
    %c0_38 = arith.constant 0 : index
    %c0_39 = arith.constant 0 : index
    %c0_40 = arith.constant 0 : index
    %30 = vector.load %arg9[%c0_38, %c0_39, %c0_40] : memref<8x8x32xf32, #tpu.memory_space<vmem>>, vector<8x8x32xf32>
    %31 = vector.extract_strided_slice %30 {offsets = [0, 0, 0], sizes = [8, 2, 32], strides = [1, 1, 1]} : vector<8x8x32xf32> to vector<8x2x32xf32>
    %cst_41 = arith.constant dense<0.000000e+00> : vector<32xf32>
    %32 = vector.multi_reduction <add>, %31, %cst_41 [0, 1] : vector<8x2x32xf32> to vector<32xf32>
    %33 = vector.shape_cast %32 : vector<32xf32> to vector<1x1x32xf32>
    %34 = arith.mulf %31, %31 : vector<8x2x32xf32>
    %cst_42 = arith.constant dense<0.000000e+00> : vector<32xf32>
    %35 = vector.multi_reduction <add>, %34, %cst_42 [0, 1] : vector<8x2x32xf32> to vector<32xf32>
    %36 = vector.shape_cast %35 : vector<32xf32> to vector<1x1x32xf32>
    %cst_43 = arith.constant 6.250000e-02 : f32
    %37 = vector.broadcast %cst_43 : f32 to vector<1x1x32xf32>
    %38 = arith.mulf %33, %37 : vector<1x1x32xf32>
    %cst_44 = arith.constant 6.250000e-02 : f32
    %39 = vector.broadcast %cst_44 : f32 to vector<1x1x32xf32>
    %40 = arith.mulf %36, %39 : vector<1x1x32xf32>
    %41 = arith.mulf %38, %38 : vector<1x1x32xf32>
    %42 = arith.subf %40, %41 : vector<1x1x32xf32>
    %cst_45 = arith.constant 9.99999974E-6 : f32
    %43 = vector.broadcast %cst_45 : f32 to vector<1x1x32xf32>
    %44 = arith.addf %42, %43 : vector<1x1x32xf32>
    %45 = math.rsqrt %44 : vector<1x1x32xf32>
    %46 = arith.mulf %45, %28 : vector<1x1x32xf32>
    %47 = vector.broadcast %46 : vector<1x1x32xf32> to vector<8x2x32xf32>
    %48 = arith.mulf %31, %47 : vector<8x2x32xf32>
    %49 = arith.mulf %38, %46 : vector<1x1x32xf32>
    %50 = arith.subf %29, %49 : vector<1x1x32xf32>
    %51 = vector.broadcast %50 : vector<1x1x32xf32> to vector<8x2x32xf32>
    %52 = arith.addf %48, %51 : vector<8x2x32xf32>
    %53 = vector.extract_strided_slice %26 {offsets = [0, 0, 32], sizes = [1, 1, 32], strides = [1, 1, 1]} : vector<1x1x64xf32> to vector<1x1x32xf32>
    %54 = vector.extract_strided_slice %27 {offsets = [0, 0, 32], sizes = [1, 1, 32], strides = [1, 1, 1]} : vector<1x1x64xf32> to vector<1x1x32xf32>
    %c0_46 = arith.constant 0 : index
    %c0_47 = arith.constant 0 : index
    %c0_48 = arith.constant 0 : index
    %55 = vector.load %arg10[%c0_46, %c0_47, %c0_48] : memref<8x8x32xf32, #tpu.memory_space<vmem>>, vector<8x8x32xf32>
    %56 = vector.extract_strided_slice %55 {offsets = [0, 0, 0], sizes = [8, 2, 32], strides = [1, 1, 1]} : vector<8x8x32xf32> to vector<8x2x32xf32>
    %cst_49 = arith.constant dense<0.000000e+00> : vector<32xf32>
    %57 = vector.multi_reduction <add>, %56, %cst_49 [0, 1] : vector<8x2x32xf32> to vector<32xf32>
    %58 = vector.shape_cast %57 : vector<32xf32> to vector<1x1x32xf32>
    %59 = arith.mulf %56, %56 : vector<8x2x32xf32>
    %cst_50 = arith.constant dense<0.000000e+00> : vector<32xf32>
    %60 = vector.multi_reduction <add>, %59, %cst_50 [0, 1] : vector<8x2x32xf32> to vector<32xf32>
    %61 = vector.shape_cast %60 : vector<32xf32> to vector<1x1x32xf32>
    %cst_51 = arith.constant 6.250000e-02 : f32
    %62 = vector.broadcast %cst_51 : f32 to vector<1x1x32xf32>
    %63 = arith.mulf %58, %62 : vector<1x1x32xf32>
    %cst_52 = arith.constant 6.250000e-02 : f32
    %64 = vector.broadcast %cst_52 : f32 to vector<1x1x32xf32>
    %65 = arith.mulf %61, %64 : vector<1x1x32xf32>
    %66 = arith.mulf %63, %63 : vector<1x1x32xf32>
    %67 = arith.subf %65, %66 : vector<1x1x32xf32>
    %cst_53 = arith.constant 9.99999974E-6 : f32
    %68 = vector.broadcast %cst_53 : f32 to vector<1x1x32xf32>
    %69 = arith.addf %67, %68 : vector<1x1x32xf32>
    %70 = math.rsqrt %69 : vector<1x1x32xf32>
    %71 = arith.mulf %70, %53 : vector<1x1x32xf32>
    %72 = vector.broadcast %71 : vector<1x1x32xf32> to vector<8x2x32xf32>
    %73 = arith.mulf %56, %72 : vector<8x2x32xf32>
    %74 = arith.mulf %63, %71 : vector<1x1x32xf32>
    %75 = arith.subf %54, %74 : vector<1x1x32xf32>
    %76 = vector.broadcast %75 : vector<1x1x32xf32> to vector<8x2x32xf32>
    %77 = arith.addf %73, %76 : vector<8x2x32xf32>
    %78 = vector.extract_strided_slice %52 {offsets = [0, 0, 0], sizes = [8, 1, 32], strides = [1, 1, 1]} : vector<8x2x32xf32> to vector<8x1x32xf32>
    %79 = vector.shape_cast %78 : vector<8x1x32xf32> to vector<8x32xf32>
    %c0_54 = arith.constant 0 : index
    %c0_55 = arith.constant 0 : index
    %c0_56 = arith.constant 0 : index
    %80 = vector.load %arg6[%c0_54, %c0_55, %c0_56] : memref<2x8x64xf32, #tpu.memory_space<vmem>>, vector<1x8x32xf32>
    %81 = vector.shape_cast %80 : vector<1x8x32xf32> to vector<8x32xf32>
    %82 = vector.shape_cast %79 : vector<8x32xf32> to vector<1x8x32xf32>
    tpu.vector_store %arg6[%c0_54, %c0_55, %c0_56], %82 {strides = array<i32>} : memref<2x8x64xf32, #tpu.memory_space<vmem>>, vector<1x8x32xf32>,
    %83 = vector.extract_strided_slice %77 {offsets = [0, 0, 0], sizes = [8, 1, 32], strides = [1, 1, 1]} : vector<8x2x32xf32> to vector<8x1x32xf32>
    %84 = vector.shape_cast %83 : vector<8x1x32xf32> to vector<8x32xf32>
    %c0_57 = arith.constant 0 : index
    %c0_58 = arith.constant 0 : index
    %c32 = arith.constant 32 : index
    %85 = vector.load %arg6[%c0_57, %c0_58, %c32] : memref<2x8x64xf32, #tpu.memory_space<vmem>>, vector<1x8x32xf32>
    %86 = vector.shape_cast %85 : vector<1x8x32xf32> to vector<8x32xf32>
    %87 = vector.shape_cast %84 : vector<8x32xf32> to vector<1x8x32xf32>
    tpu.vector_store %arg6[%c0_57, %c0_58, %c32], %87 {strides = array<i32>} : memref<2x8x64xf32, #tpu.memory_space<vmem>>, vector<1x8x32xf32>,
    %88 = vector.extract_strided_slice %52 {offsets = [0, 1, 0], sizes = [8, 1, 32], strides = [1, 1, 1]} : vector<8x2x32xf32> to vector<8x1x32xf32>
    %89 = vector.shape_cast %88 : vector<8x1x32xf32> to vector<8x32xf32>
    %c1_59 = arith.constant 1 : index
    %c0_60 = arith.constant 0 : index
    %c0_61 = arith.constant 0 : index
    %90 = vector.load %arg6[%c1_59, %c0_60, %c0_61] : memref<2x8x64xf32, #tpu.memory_space<vmem>>, vector<1x8x32xf32>
    %91 = vector.shape_cast %90 : vector<1x8x32xf32> to vector<8x32xf32>
    %92 = vector.shape_cast %89 : vector<8x32xf32> to vector<1x8x32xf32>
    tpu.vector_store %arg6[%c1_59, %c0_60, %c0_61], %92 {strides = array<i32>} : memref<2x8x64xf32, #tpu.memory_space<vmem>>, vector<1x8x32xf32>,
    %93 = vector.extract_strided_slice %77 {offsets = [0, 1, 0], sizes = [8, 1, 32], strides = [1, 1, 1]} : vector<8x2x32xf32> to vector<8x1x32xf32>
    %94 = vector.shape_cast %93 : vector<8x1x32xf32> to vector<8x32xf32>
    %c1_62 = arith.constant 1 : index
    %c0_63 = arith.constant 0 : index
    %c32_64 = arith.constant 32 : index
    %95 = vector.load %arg6[%c1_62, %c0_63, %c32_64] : memref<2x8x64xf32, #tpu.memory_space<vmem>>, vector<1x8x32xf32>
    %96 = vector.shape_cast %95 : vector<1x8x32xf32> to vector<8x32xf32>
    %97 = vector.shape_cast %94 : vector<8x32xf32> to vector<1x8x32xf32>
    tpu.vector_store %arg6[%c1_62, %c0_63, %c32_64], %97 {strides = array<i32>} : memref<2x8x64xf32, #tpu.memory_space<vmem>>, vector<1x8x32xf32>,
    return
  }
}

</mosaic_0001>

<bundles_post_ra>
// kernel: lstm_block_forward.1
= control target key start
LH: loop header
LB: loop body
LE: loop exit
PB: predicated region body
PF: predicated region fallthrough
CT: control target
= control target key end

     0   :  { %11 = vsyncpa [#allocation9], 0  ;;  %vm41_vm0 = vcmask 130048   ;;  %vm303_vm1 = vcmask 261120   ;;  %v1105_v14 = vmov 0.0   ;;  %s1498_s0 = inlined_call_operand.vmem [shape: f32[64,16], index: 0, kind: input, shape index: {}]   ;;  %s1499_s1 = inlined_call_operand.vmem [shape: f32[2,16,128], index: 1, kind: input, shape index: {}]   ;;  %s1500_s2 = inlined_call_operand.vmem [shape: f32[2,32,128], index: 2, kind: input, shape index: {}]   ;;  %s1501_s3 = inlined_call_operand.vmem [shape: f32[2,1,128], index: 3, kind: input, shape index: {}]   ;;  %s1502_s4 = inlined_call_operand.vmem [shape: f32[1,1,64], index: 4, kind: input, shape index: {}]   ;;  %s1503_s5 = inlined_call_operand.vmem [shape: f32[1,1,64], index: 5, kind: input, shape index: {}]   ;;  %s1504_s6 = inlined_call_operand.hbm [shape: f32[2,8,64], index: 6, kind: output, shape index: {}]  }
   0x1   :  { %v32_v0 = vld [vmem:[%s1499_s1] sm:$0xff]  ;;  %v33_v1 = vld [vmem:[%s1499_s1 + $0x8] sm:$0xff]  ;;  %v906_v3 = vld [vmem:[%s1499_s1 + $0x10] sm:$0xff]  ;;  %304 = vst.msk [vmem:[#allocation6] sm:$0xff] %vm303_vm1, %v1105_v14 }
   0x2   :  { %v1012_v2 = vpack.c.bf16 %v33_v1, %v32_v0  ;;  %v907_v4 = vld [vmem:[%s1499_s1 + $0x18] sm:$0xff]  ;;  %v24_v5 = vld [vmem:[%s1498_s0] sm:$0xff]  ;;  %v25_v7 = vld [vmem:[%s1498_s0 + $0x8] sm:$0xff]  ;;  %305 = vst.msk [vmem:[#allocation6 + $0x8] sm:$0xff] %vm303_vm1, %v1105_v14 }
   0x3   :  { %v1016_v6 = vpack.c.bf16 %v907_v4, %v906_v3  ;;  %962 = vmatprep.mubr.msk.f32.mxu0 %vm41_vm0, %v24_v5  ;;  %978 = vmatprep.mubr.msk.f32.mxu1 %vm41_vm0, %v24_v5  ;;  %v26_v8 = vld [vmem:[%s1498_s0 + $0x10] sm:$0xff]  ;;  %v27_v9 = vld [vmem:[%s1498_s0 + $0x18] sm:$0xff]  ;;  %v28_v10 = vld [vmem:[%s1498_s0 + $0x20] sm:$0xff]  ;;  %306 = vst.msk [vmem:[#allocation7] sm:$0xff] %vm303_vm1, %v1105_v14 }
   0x4   :  { %1013 = vmatprep.subr.bf16.mxu0 %v1012_v2  ;;  %v29_v11 = vld [vmem:[%s1498_s0 + $0x28] sm:$0xff]  ;;  %v30_v12 = vld [vmem:[%s1498_s0 + $0x30] sm:$0xff]  ;;  %v31_v13 = vld [vmem:[%s1498_s0 + $0x38] sm:$0xff]  ;;  %307 = vst.msk [vmem:[#allocation7 + $0x8] sm:$0xff] %vm303_vm1, %v1105_v14 }
   0x5   :  { %1017 = vmatprep.subr.bf16.mxu1 %v1016_v6  ;;  %1015 = vmatpush3.bf16.msra.mxu0 %v1012_v2  ;;  %v1212_v15 = vld [vmem:[%s1500_s2] sm:$0xff]  ;;  %v1217_v16 = vld [vmem:[%s1500_s2 + $0x8] sm:$0xff]  ;;  %v1222_v17 = vld [vmem:[%s1500_s2 + $0x10] sm:$0xff] }
   0x6   :  { %1019 = vmatpush3.bf16.msra.mxu1 %v1016_v6  ;;  %v1227_v18 = vld [vmem:[%s1500_s2 + $0x18] sm:$0xff]  ;;  %v1232_v19 = vld [vmem:[%s1500_s2 + $0x20] sm:$0xff]  ;;  %v1237_v20 = vld [vmem:[%s1500_s2 + $0x28] sm:$0xff] }
   0x7   :  { %v1242_v21 = vld [vmem:[%s1500_s2 + $0x30] sm:$0xff]  ;;  %v1247_v22 = vld [vmem:[%s1500_s2 + $0x38] sm:$0xff]  ;;  %v897_v23 = vld [vmem:[%s1501_s3] ss:$0 sm:$0xff]  ;;  %s1255_s2 = smov 0  }
   0x8   :  { %963 = vmatmul.mubr.msk.f32.vlgmr.msra.gmra.mrb[0].mxu0 %vm41_vm0, %v25_v7  ;;  %v909_v24 = vld [vmem:[%s1501_s3 + $0x1] ss:$0 sm:$0xff] }
   0x9   :  { %979 = vmatmul.mubr.msk.f32.vlgmr.msra.gmra.mrb[0].mxu1 %vm41_vm0, %v25_v7  ;;  %965 = vmatprep.mubr.msk.f32.mxu0 %vm41_vm0, %v26_v8 }
   0xa   :  { %981 = vmatprep.mubr.msk.f32.mxu1 %vm41_vm0, %v26_v8 }
   0xc   :  { %966 = vmatmul.mubr.msk.f32.gmra.mrb[2].mxu0 %vm41_vm0, %v27_v9 }
   0xd   :  { %982 = vmatmul.mubr.msk.f32.gmra.mrb[2].mxu1 %vm41_vm0, %v27_v9  ;;  %968 = vmatprep.mubr.msk.f32.mxu0 %vm41_vm0, %v28_v10 }
   0xe   :  { %984 = vmatprep.mubr.msk.f32.mxu1 %vm41_vm0, %v28_v10 }
  0x10   :  { %969 = vmatmul.mubr.msk.f32.gmra.mrb[4].mxu0 %vm41_vm0, %v29_v11 }
  0x11   :  { %985 = vmatmul.mubr.msk.f32.gmra.mrb[4].mxu1 %vm41_vm0, %v29_v11  ;;  %971 = vmatprep.mubr.msk.f32.mxu0 %vm41_vm0, %v30_v12 }
  0x12   :  { %987 = vmatprep.mubr.msk.f32.mxu1 %vm41_vm0, %v30_v12 }
  0x14   :  { %972 = vmatmul.mubr.msk.f32.gmra.mrb[6].mxu0 %vm41_vm0, %v31_v13 }
  0x15   :  { %988 = vmatmul.mubr.msk.f32.gmra.mrb[6].mxu1 %vm41_vm0, %v31_v13 }
  0xdb   :  { %v964_v25 = vpop.f32.mrb[0].mxu0 }
  0xdc   :  { %v138_v26 = vadd.f32 %v964_v25, %v897_v23  ;;  %v980_v27 = vpop.f32.mrb[0].mxu1  ;;  %v132_v28 = vpop.f32.mrb[1].mxu0 }
  0xdd   :  { %v262_v29 = vadd.f32 %v980_v27, %v909_v24  ;;  %v133_v30 = vadd.f32 %v897_v23, %v132_v28  ;;  %v256_v31 = vpop.f32.mrb[1].mxu1 }
  0xde   :  { %172 = vst [vmem:[#allocation2 + $0x8] sm:$0xff] %v138_v26  ;;  %v257_v32 = vadd.f32 %v909_v24, %v256_v31 }
  0xdf   :  { %296 = vst [vmem:[#allocation3 + $0x8] sm:$0xff] %v262_v29  ;;  %171 = vst [vmem:[#allocation2] sm:$0xff] %v133_v30  ;;  %v967_v33 = vpop.f32.mrb[2].mxu0 }
  0xe0   :  { %295 = vst [vmem:[#allocation3] sm:$0xff] %v257_v32  ;;  %v148_v34 = vadd.f32 %v967_v33, %v897_v23  ;;  %v983_v35 = vpop.f32.mrb[2].mxu1  ;;  %v142_v36 = vpop.f32.mrb[3].mxu0 }
  0xe1   :  { %v272_v37 = vadd.f32 %v983_v35, %v909_v24  ;;  %v143_v38 = vadd.f32 %v897_v23, %v142_v36  ;;  %v266_v39 = vpop.f32.mrb[3].mxu1 }
  0xe2   :  { %174 = vst [vmem:[#allocation2 + $0x18] sm:$0xff] %v148_v34  ;;  %v267_v40 = vadd.f32 %v909_v24, %v266_v39 }
  0xe3   :  { %298 = vst [vmem:[#allocation3 + $0x18] sm:$0xff] %v272_v37  ;;  %173 = vst [vmem:[#allocation2 + $0x10] sm:$0xff] %v143_v38  ;;  %v970_v41 = vpop.f32.mrb[4].mxu0 }
  0xe4   :  { %297 = vst [vmem:[#allocation3 + $0x10] sm:$0xff] %v267_v40  ;;  %v158_v42 = vadd.f32 %v970_v41, %v897_v23  ;;  %v986_v43 = vpop.f32.mrb[4].mxu1  ;;  %v152_v44 = vpop.f32.mrb[5].mxu0 }
  0xe5   :  { %v282_v45 = vadd.f32 %v986_v43, %v909_v24  ;;  %v153_v46 = vadd.f32 %v897_v23, %v152_v44  ;;  %v276_v47 = vpop.f32.mrb[5].mxu1 }
  0xe6   :  { %176 = vst [vmem:[#allocation2 + $0x28] sm:$0xff] %v158_v42  ;;  %v277_v48 = vadd.f32 %v909_v24, %v276_v47 }
  0xe7   :  { %300 = vst [vmem:[#allocation3 + $0x28] sm:$0xff] %v282_v45  ;;  %175 = vst [vmem:[#allocation2 + $0x20] sm:$0xff] %v153_v46  ;;  %v973_v49 = vpop.f32.mrb[6].mxu0 }
  0xe8   :  { %299 = vst [vmem:[#allocation3 + $0x20] sm:$0xff] %v277_v48  ;;  %v168_v50 = vadd.f32 %v973_v49, %v897_v23  ;;  %v989_v51 = vpop.f32.mrb[6].mxu1  ;;  %v162_v52 = vpop.f32.mrb[7].mxu0 }
  0xe9   :  { %v292_v53 = vadd.f32 %v989_v51, %v909_v24  ;;  %v163_v54 = vadd.f32 %v897_v23, %v162_v52  ;;  %v286_v55 = vpop.f32.mrb[7].mxu1 }
  0xea   :  { %178 = vst [vmem:[#allocation2 + $0x38] sm:$0xff] %v168_v50  ;;  %v287_v56 = vadd.f32 %v909_v24, %v286_v55 }
  0xeb   :  { %302 = vst [vmem:[#allocation3 + $0x38] sm:$0xff] %v292_v53  ;;  %177 = vst [vmem:[#allocation2 + $0x30] sm:$0xff] %v163_v54 }
  0xec   :  { %301 = vst [vmem:[#allocation3 + $0x30] sm:$0xff] %v287_v56 }
  0xed LB: > { %v1021_v57 = vpack.c.bf16 %v1217_v16, %v1212_v15  ;;  %v1027_v58 = vpack.c.bf16 %v1237_v20, %v1232_v19  ;;  %v1106_v59 = vmov 0.0|0.0   ;;  %v1024_v60 = vpack.c.bf16 %v1227_v18, %v1222_v17  ;;  %v408_v62 = vld [vmem:[#allocation7] sm:$0xff]  ;;  %s1109_s3 = smov 32   ;;  %v326_v0 = vld [vmem:[#allocation6] sm:$0xff]  ;;  %v447_v1 = vld [vmem:[#allocation6 + $0x8] sm:$0xff]  ;;  %s442_s14 = ssub.s32 7, %s1103_s2  ;;  %s1103_s2 = sphi %s1255_s2, %s322_s2  }
  0xee   : > { %1020 = vmatprep.subr.bf16.mxu0 %v1106_v59  ;;  %1026 = vmatprep.subr.bf16.mxu1 %v1106_v59  ;;  %v1030_v61 = vpack.c.bf16 %v1247_v22, %v1242_v21  ;;  %vm1107_vm2 = vmmov 0   ;;  %v1108_v63 = vmov 0.0   ;;  %v530_v2 = vld [vmem:[#allocation7 + $0x8] sm:$0xff]  ;;  %s922_s15 = sshll.u32 %s1103_s2, 3  ;;  %s1274_s16 = sshll.u32 %s442_s14, 3 }
  0xef   : > { %1022 = vmatpush3.bf16.msra.mxu0 %v1021_v57  ;;  %1028 = vmatpush3.bf16.msra.mxu1 %v1027_v58  ;;  %s324_s17 = scalar_lea.vmem [#allocation2], %s922_s15  ;;  %s444_s18 = scalar_lea.vmem [#allocation3], %s1274_s16 }
  0xf0   : > { %1023 = vmatprep.subr.bf16.mxu0 %v1106_v59  ;;  %998 = vmatprep.mubr.msk.f32.mxu0 %vm1107_vm2, %v1108_v63  ;;  %s1110_s19 = smov 64   ;;  %s1111_s20 = smov 96  }
  0xf1   : > { %1029 = vmatprep.subr.bf16.mxu1 %v1106_v59  ;;  %1009 = vmatprep.mubr.msk.f32.mxu1 %vm1107_vm2, %v1108_v63  ;;  %s440_s21 = scalar_lea.vmem [#allocation4], %s922_s15  ;;  %s562_s0 = scalar_lea.vmem [#allocation5], %s1274_s16 }
  0xf2   : > { %410 = vrot.lane.b32.xlu1 %v408_v62, %s1109_s3  ;;  %v325_v3 = vld [vmem:[%s324_s17] sm:$0xff]  ;;  %s322_s2 = sadd.s32 1, %s1103_s2  }
  0xf3   : > { %1025 = vmatpush3.bf16.msra.mxu0 %v1024_v60  ;;  %1031 = vmatpush3.bf16.msra.mxu1 %v1030_v61  ;;  %v445_v4 = vld [vmem:[%s444_s18] sm:$0xff]  ;;  %p319_p0 = scmp.ge.s32.totalorder %s322_s2, 8  }
  0xf4   :  { %vm574_vm3 = vcmask (%p319_p0), 254976   ;;  %v632_v59 = vlaneseq (%p319_p0)  ;;  %s1114_s24 = smov (%p319_p0), 32   ;;  %vm793_vm4 = vcmask (%p319_p0), 1042434   ;;  %vm796_vm5 = vcmask (%p319_p0), 1043459  }
  0xf5   :  { %vm799_vm6 = vcmask (%p319_p0), 1044484   ;;  %vm802_vm7 = vcmask (%p319_p0), 1045509   ;;  %vm805_vm8 = vcmask (%p319_p0), 1046534   ;;  %vm790_vm9 = vcmask (%p319_p0), 1041409  }
  0xf6   : > { %999 = vmatmul.mubr.msk.f32.vlgmr.msra.gmra.mrb[0].mxu0 %vm303_vm1, %v326_v0  ;;  %1010 = vmatmul.mubr.msk.f32.vlgmr.msra.gmra.mrb[0].mxu1 %vm303_vm1, %v447_v1  ;;  %vm848_vm10 = vcmask (%p319_p0), 261121   ;;  %vm808_vm11 = vcmask (%p319_p0), 1047559   ;;  %vm850_vm12 = vcmask (%p319_p0), 253952   ;;  %vm864_vm13 = vcmask (%p319_p0), 523521  }
  0xf7   : > { %532 = vrot.lane.b32.xlu1 %v530_v2, %s1109_s3  ;;  %vm837_vm14 = vcmask (%p319_p0), 523520   ;;  %vm866_vm15 = vcmask (%p319_p0), 516352  }
 0x164   : > { %v411_v33 = vpop.permute.xlu1 %410 }
 0x169   : > { %v533_v35 = vpop.permute.xlu1 %532 }
 0x1c9   : > { %v396_v5 = vpop.f32.mrb[0].mxu0  ;;  %v517_v6 = vpop.f32.mrb[0].mxu1 }
 0x1ca   : > { %v400_v7 = vadd.f32 %v396_v5, %v325_v3  ;;  %v1000_v8 = vpop.f32.mrb[1].mxu0  ;;  %v521_v9 = vadd.f32 %v517_v6, %v445_v4  ;;  %v1011_v10 = vpop.f32.mrb[1].mxu1 }
 0x1cb   :  { %v1343_v10 = vshrl.u32 (%p319_p0), %v632_v59, 7 }
 0x1cc   : > { %1053 = vtanh.f32 %v400_v7  ;;  %v924_v13 = vmul.f32 -1.442695, %v400_v7  ;;  %v927_v14 = vmul.f32 -1.442695, %v521_v9 }
 0x1cd   : > { %1055 = vtanh.f32 %v521_v9 }
 0x1ce   : > { %1057 = vpow2.f32 %v924_v13 }
 0x1cf   : > { %1059 = vpow2.f32 %v927_v14 }
 0x1d6   : > { %v1054_v11 = vpop.eup %1053 }
 0x1d7   : > { %415 = vrot.lane.b32.xlu0 %v1054_v11, %s1110_s19  ;;  %v1056_v12 = vpop.eup %1055  ;;  %v564_v11 = vld [vmem:[%s1502_s4] sm:$0x1] (%p319_p0)  ;;  %s1112_s4 = smov (%p319_p0), 96  }
 0x1d8   : > { %v1058_v23 = vpop.eup %1057 }
 0x1d9   : > { %v404_v24 = vadd.f32 1.0, %v1058_v23  ;;  %v1060_v25 = vpop.eup %1059 }
 0x1da   : > { %v525_v26 = vadd.f32 1.0, %v1060_v25  ;;  %v1354_v25 = vsub.s32 (%p319_p0), 0, %v1343_v10 }
 0x1db   : > { %537 = vrot.lane.b32.xlu0 %v1056_v12, %s1110_s19  ;;  %1061 = vrcp.f32 %v404_v24 }
 0x1dc   : > { %1063 = vrcp.f32 %v525_v26 }
 0x1e5   : > { %v1062_v27 = vpop.eup %1061 }
 0x1e6   : > { %v1064_v30 = vpop.eup %1063  ;;  %v413_v34 = vmul.f32 %v1062_v27, %v411_v33 }
 0x1e7   : > { %v535_v38 = vmul.f32 %v1064_v30, %v533_v35 }
 0x249   : > { %v416_v28 = vpop.permute.xlu0 %415 }
 0x24a   : > { %v418_v29 = vmul.f32 %v1062_v27, %v416_v28 }
 0x24c   : > { %420 = vrot.lane.b32.xlu0 %v418_v29, %s1109_s3 }
 0x24d   : > { %v538_v31 = vpop.permute.xlu0 %537 }
 0x24e   : > { %v540_v32 = vmul.f32 %v1064_v30, %v538_v31  ;;  %v728_v31 = vrot.slane (%p319_p0), %v564_v11, %v1354_v25 }
 0x250   : > { %542 = vrot.lane.b32.xlu1 %v540_v32, %s1109_s3 }
 0x2be   : > { %v421_v36 = vpop.permute.xlu0 %420 }
 0x2bf   : > { %v423_v37 = vadd.f32 %v421_v36, %v413_v34 }
 0x2c1   : > { %1065 = vtanh.f32 %v423_v37 }
 0x2c2   : > { %v543_v39 = vpop.permute.xlu1 %542 }
 0x2c3   : > { %v545_v40 = vadd.f32 %v543_v39, %v535_v38 }
 0x2c5   : > { %1067 = vtanh.f32 %v545_v40 }
 0x2cb   : > { %v1066_v41 = vpop.eup %1065 }
 0x2cc   : > { %426 = vrot.lane.b32.xlu0 %v1066_v41, %s1110_s19 }
 0x2cf   : > { %v1068_v42 = vpop.eup %1067 }
 0x2d0   : > { %548 = vrot.lane.b32.xlu1 %v1068_v42, %s1110_s19 }
 0x2d4   : > { %436 = vrot.lane.b32.xlu1 %v423_v37, %s1111_s20 }
 0x2d8   : > { %558 = vrot.lane.b32.xlu1 %v545_v40, %s1111_s20 }
 0x33e   : > { %v427_v43 = vpop.permute.xlu0 %426 }
 0x33f   : > { %v429_v44 = vmul.f32 %v1062_v27, %v427_v43 }
 0x341   : > { %431 = vrot.lane.b32.xlu0 %v429_v44, %s1109_s3 }
 0x342   : > { %v549_v45 = vpop.permute.xlu1 %548 }
 0x343   : > { %v551_v46 = vmul.f32 %v1064_v30, %v549_v45 }
 0x345   : > { %553 = vrot.lane.b32.xlu0 %v551_v46, %s1109_s3 }
 0x346   : > { %v437_v47 = vpop.permute.xlu1 %436 }
 0x347   : > { %439 = vst.msk [vmem:[#allocation7] sm:$0xff] %vm303_vm1, %v437_v47 }
 0x349   :  { %729 = vrot.lane.b32.xlu0 (%p319_p0), %v728_v31, %s1112_s4 }
 0x34a   : > { %v559_v48 = vpop.permute.xlu1 %558 }
 0x34b   : > { %561 = vst.msk [vmem:[#allocation7 + $0x8] sm:$0xff] %vm303_vm1, %v559_v48 }
 0x3b2   :  { %321 = sbr.rel (!%p319_p0) target bundleno = 237 (0xed), region = 61 }
 0x3b3   : > { %v432_v49 = vpop.permute.xlu0 %431 }
 0x3b4   : > { %434 = vst.msk [vmem:[#allocation6] sm:$0xff] %vm303_vm1, %v432_v49  ;;  %441 = vst.msk [vmem:[%s440_s21] sm:$0xff] %vm303_vm1, %v432_v49 }
 0x3b7   : > { %v554_v50 = vpop.permute.xlu0 %553 }
 0x3b8   : > { %556 = vst.msk [vmem:[#allocation6 + $0x8] sm:$0xff] %vm303_vm1, %v554_v50  ;;  %563 = vst.msk [vmem:[%s562_s0] sm:$0xff] %vm303_vm1, %v554_v50 }
 0x3bb   :  { %v1299_v51 = vld [vmem:[#allocation4] sm:$0xff]  ;;  %v1301_v52 = vld [vmem:[#allocation4 + $0x8] sm:$0xff]  ;;  %v1303_v53 = vld [vmem:[#allocation4 + $0x10] sm:$0xff] }
 0x3bc   :  { %v1305_v54 = vld [vmem:[#allocation4 + $0x18] sm:$0xff]  ;;  %v575_v55 = vsel %vm574_vm3, %v1299_v51, 0.0  ;;  %v576_v56 = vsel %vm574_vm3, %v1301_v52, 0.0  ;;  %v596_v57 = vmul.f32 %v1299_v51, %v1299_v51  ;;  %v597_v15 = vmul.f32 %v1301_v52, %v1301_v52  ;;  %v1315_v16 = vld [vmem:[#allocation4 + $0x20] sm:$0xff]  ;;  %v1323_v21 = vld [vmem:[#allocation4 + $0x28] sm:$0xff] }
 0x3bd   :  { %v577_v17 = vadd.f32 %v576_v56, %v575_v55  ;;  %v578_v18 = vsel %vm574_vm3, %v1303_v53, 0.0  ;;  %v580_v19 = vsel %vm574_vm3, %v1305_v54, 0.0  ;;  %v598_v20 = vmul.f32 %v1303_v53, %v1303_v53  ;;  %v1333_v0 = vld [vmem:[#allocation4 + $0x30] sm:$0xff]  ;;  %v1341_v7 = vld [vmem:[#allocation4 + $0x38] sm:$0xff] }
 0x3be   :  { %v599_v58 = vmul.f32 %v1305_v54, %v1305_v54  ;;  %v582_v60 = vsel %vm574_vm3, %v1315_v16, 0.0  ;;  %v600_v61 = vmul.f32 %v1315_v16, %v1315_v16  ;;  %v604_v62 = vsel %vm574_vm3, %v596_v57, 0.0 }
 0x3bf   :  { %v579_v22 = vadd.f32 %v578_v18, %v577_v17  ;;  %v605_v63 = vsel %vm574_vm3, %v597_v15, 0.0  ;;  %v607_v3 = vsel %vm574_vm3, %v598_v20, 0.0  ;;  %v584_v4 = vsel %vm574_vm3, %v1323_v21, 0.0  ;;  %v1369_v17 = vld [vmem:[#allocation5] sm:$0xff]  ;;  %v1371_v18 = vld [vmem:[#allocation5 + $0x8] sm:$0xff] }
 0x3c0   :  { %v606_v2 = vadd.f32 %v605_v63, %v604_v62  ;;  %v601_v5 = vmul.f32 %v1323_v21, %v1323_v21  ;;  %v609_v6 = vsel %vm574_vm3, %v599_v58, 0.0  ;;  %v586_v12 = vsel %vm574_vm3, %v1333_v0, 0.0 }
 0x3c1   :  { %v581_v1 = vadd.f32 %v580_v19, %v579_v22  ;;  %v602_v13 = vmul.f32 %v1333_v0, %v1333_v0  ;;  %v611_v14 = vsel %vm574_vm3, %v600_v61, 0.0  ;;  %v588_v26 = vsel %vm574_vm3, %v1341_v7, 0.0  ;;  %v1373_v19 = vld [vmem:[#allocation5 + $0x10] sm:$0xff] }
 0x3c2   :  { %v608_v9 = vadd.f32 %v607_v3, %v606_v2  ;;  %v603_v27 = vmul.f32 %v1341_v7, %v1341_v7  ;;  %v613_v28 = vsel %vm574_vm3, %v601_v5, 0.0  ;;  %v668_v20 = vsel %vm574_vm3, %v1369_v17, 0.0 }
 0x3c3   :  { %v583_v8 = vadd.f32 %v582_v60, %v581_v1  ;;  %v615_v32 = vsel %vm574_vm3, %v602_v13, 0.0  ;;  %v669_v22 = vsel %vm574_vm3, %v1371_v18, 0.0  ;;  %v689_v58 = vmul.f32 %v1369_v17, %v1369_v17 }
 0x3c4   :  { %v610_v24 = vadd.f32 %v609_v6, %v608_v9  ;;  %v617_v35 = vsel %vm574_vm3, %v603_v27, 0.0  ;;  %v690_v59 = vmul.f32 %v1371_v18, %v1371_v18  ;;  %v670_v61 = vadd.f32 %v669_v22, %v668_v20  ;;  %v1405_v27 = vld [vmem:[#allocation5 + $0x28] sm:$0xff] }
 0x3c5   :  { %v585_v23 = vadd.f32 %v584_v4, %v583_v8  ;;  %v671_v62 = vsel %vm574_vm3, %v1373_v19, 0.0  ;;  %v691_v1 = vmul.f32 %v1373_v19, %v1373_v19  ;;  %v697_v2 = vsel %vm574_vm3, %v689_v58, 0.0  ;;  %v1391_v4 = vld [vmem:[#allocation5 + $0x18] sm:$0xff] }
 0x3c6   :  { %v612_v30 = vadd.f32 %v611_v14, %v610_v24  ;;  %v698_v3 = vsel %vm574_vm3, %v690_v59, 0.0  ;;  %v672_v5 = vadd.f32 %v671_v62, %v670_v61  ;;  %v673_v8 = vsel %vm574_vm3, %v1391_v4, 0.0 }
 0x3c7   :  { %v587_v29 = vadd.f32 %v586_v12, %v585_v23  ;;  %v699_v6 = vadd.f32 %v698_v3, %v697_v2  ;;  %v692_v9 = vmul.f32 %v1391_v4, %v1391_v4  ;;  %v1398_v12 = vld [vmem:[#allocation5 + $0x20] sm:$0xff]  ;;  %v694_v31 = vmul.f32 %v1405_v27, %v1405_v27 }
 0x3c8   :  { %v614_v34 = vadd.f32 %v613_v28, %v612_v30  ;;  %v674_v13 = vadd.f32 %v673_v8, %v672_v5  ;;  %v675_v23 = vsel %vm574_vm3, %v1398_v12, 0.0  ;;  %v693_v24 = vmul.f32 %v1398_v12, %v1398_v12 }
 0x3c9   :  { %v589_v33 = vadd.f32 %v588_v26, %v587_v29  ;;  %v702_v26 = vsel %vm574_vm3, %v692_v9, 0.0  ;;  %v677_v30 = vsel %vm574_vm3, %v1405_v27, 0.0  ;;  %v1113_v8 = vmov 1966171168  }
 0x3ca   :  { %v616_v37 = vadd.f32 %v615_v32, %v614_v34  ;;  %v676_v28 = vadd.f32 %v675_v23, %v674_v13  ;;  %v704_v32 = vsel %vm574_vm3, %v693_v24, 0.0  ;;  %v748_v9 = vunpack.c.l.s4 %v1113_v8  ;;  %v730_v23 = vpop.permute.xlu0 %729 }
 0x3cb   :  { %v590_v36 = vrot.slane %v589_v33, 4 }
 0x3cc   :  { %v618_v39 = vadd.f32 %v617_v35, %v616_v37  ;;  %v678_v34 = vadd.f32 %v677_v30, %v676_v28  ;;  %v749_v13 = vunpack.c.0.s8 %v748_v9 }
 0x3cd   :  { %v591_v38 = vadd.f32 %v590_v36, %v589_v33  ;;  %v1412_v33 = vld [vmem:[#allocation5 + $0x30] sm:$0xff] }
 0x3ce   :  { %v619_v41 = vrot.slane %v618_v39, 4  ;;  %v679_v36 = vsel %vm574_vm3, %v1412_v33, 0.0  ;;  %v695_v37 = vmul.f32 %v1412_v33, %v1412_v33  ;;  %v752_v24 = vsub.s32 %v749_v13, %v1343_v10 }
 0x3cf   :  { %v592_v40 = vrot.slane %v591_v38, 2 }
 0x3d0   :  { %v620_v43 = vadd.f32 %v619_v41, %v618_v39  ;;  %v1419_v39 = vld [vmem:[#allocation5 + $0x38] sm:$0xff] }
 0x3d1   :  { %v593_v42 = vadd.f32 %v592_v40, %v591_v38  ;;  %v706_v38 = vsel %vm574_vm3, %v694_v31, 0.0  ;;  %v680_v40 = vadd.f32 %v679_v36, %v678_v34  ;;  %v565_v31 = vld [vmem:[%s1503_s5] sm:$0x1]  ;;  %s1115_s5 = smov [#allocation8]  }
 0x3d2   :  { %v621_v45 = vrot.slane %v620_v43, 2  ;;  %s873_s27 = sshll.u32 %s1115_s5, 4  ;;  %s874_s27 = int_to_ptr.vmem [resolvable:$true] %s873_s27 }
 0x3d3   :  { %v594_v44 = vrot.slane %v593_v42, 1  ;;  %s1073_s28 = scalar_lea.vmem %s874_s27, 256  ;;  %p1078_p2 = scmp.lt.s32.totalorder %s874_s27, %s874_s27 }
 0x3d4   :  { %v622_v47 = vadd.f32 %v621_v45, %v620_v43  ;;  %v696_v43 = vmul.f32 %v1419_v39, %v1419_v39  ;;  %p1074_p1 = scmp.ne.s32.totalorder %s874_s27, %s1073_s28  ;;  %p1079_p3 = scmp.lt.s32.totalorder %s1073_s28, %s1073_s28 }
 0x3d5   :  { %v595_v46 = vadd.f32 %v594_v44, %v593_v42  ;;  %v681_v42 = vsel %vm574_vm3, %v1419_v39, 0.0  ;;  %v708_v44 = vsel %vm574_vm3, %v695_v37, 0.0 }
 0x3d6   :  { %v623_v48 = vrot.slane %v622_v47, 1  ;;  %v682_v45 = vadd.f32 %v681_v42, %v680_v40  ;;  %p1080_p4 = por %p1079_p3, %p1078_p2 }
 0x3d7   :  { %v1365_v49 = vmul.f32 0.0625, %v595_v46 }
 0x3d8   :  { %v624_v50 = vadd.f32 %v623_v48, %v622_v47  ;;  %v710_v47 = vsel %vm574_vm3, %v696_v43, 0.0  ;;  %v683_v48 = vrot.slane %v682_v45, 4  ;;  %p1081_p5 = pnand %p1080_p4, %p1074_p1 }
 0x3d9   :  { %v627_v55 = vmul.f32 %v1365_v49, %v1365_v49 }
 0x3da   :  { %v626_v56 = vmul.f32 0.0625, %v624_v50 }
 0x3dc   :  { %v628_v57 = vsub.f32 %v626_v56, %v627_v55  ;;  %v684_v55 = vadd.f32 %v683_v48, %v682_v45 }
 0x3de   :  { %v629_v15 = vadd.f32 1e-05, %v628_v57  ;;  %v685_v57 = vrot.slane %v684_v55, 2 }
 0x3e0   :  { %1069 = vrsqrt.f32 %v629_v15  ;;  %v686_v20 = vadd.f32 %v685_v57, %v684_v55 }
 0x3e2   :  { %v687_v58 = vrot.slane %v686_v20, 1 }
 0x3ea   :  { %v1070_v60 = vpop.eup %1069 }
 0x3eb   :  { %v1385_v63 = vmul.f32 %v1070_v60, %v564_v11  ;;  %v700_v11 = vsel %vm574_vm3, %v691_v1, 0.0  ;;  %v688_v60 = vadd.f32 %v687_v58, %v686_v20 }
 0x3ec   :  { %v701_v14 = vadd.f32 %v700_v11, %v699_v6 }
 0x3ed   :  { %v718_v1 = vmul.f32 0.0625, %v688_v60  ;;  %v644_v11 = vmul.f32 %v1385_v63, %v1365_v49  ;;  %v635_v10 = vrot.slane %v1385_v63, %v1354_v25 }
 0x3ee   :  { %v703_v29 = vadd.f32 %v702_v26, %v701_v14 }
 0x3ef   :  { %v720_v3 = vmul.f32 %v718_v1, %v718_v1  ;;  %v637_v37 = vmul.f32 %v635_v10, %v1301_v52  ;;  %v638_v40 = vmul.f32 %v635_v10, %v1303_v53  ;;  %v639_v42 = vmul.f32 %v635_v10, %v1305_v54 }
 0x3f0   :  { %v705_v35 = vadd.f32 %v704_v32, %v703_v29  ;;  %v640_v63 = vmul.f32 %v635_v10, %v1315_v16  ;;  %v641_v45 = vmul.f32 %v635_v10, %v1323_v21  ;;  %v643_v55 = vmul.f32 %v635_v10, %v1341_v7 }
 0x3f2   :  { %v707_v41 = vadd.f32 %v706_v38, %v705_v35  ;;  %v645_v35 = vsub.f32 %v565_v31, %v644_v11 }
 0x3f4   :  { %v709_v46 = vadd.f32 %v708_v44, %v707_v41  ;;  %v650_v36 = vrot.slane %v645_v35, %v1354_v25  ;;  %v636_v41 = vmul.f32 %v635_v10, %v1299_v51 }
 0x3f6   :  { %v711_v50 = vadd.f32 %v710_v47, %v709_v46  ;;  %v653_v43 = vadd.f32 %v650_v36, %v637_v37  ;;  %v654_v44 = vadd.f32 %v650_v36, %v638_v40  ;;  %v652_v52 = vadd.f32 %v650_v36, %v636_v41 }
 0x3f7   :  { %v655_v46 = vadd.f32 %v650_v36, %v639_v42  ;;  %v642_v47 = vmul.f32 %v635_v10, %v1333_v0  ;;  %v656_v53 = vadd.f32 %v650_v36, %v640_v63 }
 0x3f8   :  { %v712_v56 = vrot.slane %v711_v50, 4  ;;  %v792_v48 = vrot.slane %v654_v44, 6 }
 0x3f9   :  { %v795_v51 = vrot.slane %v655_v46, 5  ;;  %v798_v57 = vrot.slane %v656_v53, 4 }
 0x3fa   :  { %v713_v15 = vadd.f32 %v712_v56, %v711_v50  ;;  %v657_v50 = vadd.f32 %v650_v36, %v641_v45  ;;  %v658_v56 = vadd.f32 %v650_v36, %v642_v47 }
 0x3fc   :  { %v714_v22 = vrot.slane %v713_v15, 2  ;;  %v804_v58 = vrot.slane %v658_v56, 2 }
 0x3fe   :  { %v715_v59 = vadd.f32 %v714_v22, %v713_v15  ;;  %v801_v15 = vrot.slane %v657_v50, 3  ;;  %v659_v22 = vadd.f32 %v650_v36, %v643_v55 }
 0x400   :  { %v716_v61 = vrot.slane %v715_v59, 1 }
 0x402   :  { %v717_v62 = vadd.f32 %v716_v61, %v715_v59 }
 0x404   :  { %v719_v2 = vmul.f32 0.0625, %v717_v62  ;;  %v807_v62 = vrot.slane %v659_v22, 1 }
 0x406   :  { %v721_v5 = vsub.f32 %v719_v2, %v720_v3  ;;  %851 = vst.msk [vmem:[#allocation8 + $0xf] sm:$0x1] %vm850_vm12, %v807_v62 }
 0x408   :  { %v722_v6 = vadd.f32 1e-05, %v721_v5 }
 0x40a   :  { %1071 = vrsqrt.f32 %v722_v6 }
 0x414   :  { %v1072_v14 = vpop.eup %1071 }
 0x415   :  { %v732_v26 = vmul.f32 %v1072_v14, %v730_v23 }
 0x417   :  { %v745_v28 = vmul.f32 %v732_v26, %v718_v1  ;;  %v736_v38 = vrot.slane %v732_v26, %v1354_v25 }
 0x419   :  { %v753_v29 = vrot.slane %v745_v28, %v752_v24  ;;  %v738_v1 = vmul.f32 %v736_v38, %v1371_v18  ;;  %v739_v5 = vmul.f32 %v736_v38, %v1373_v19  ;;  %v740_v6 = vmul.f32 %v736_v38, %v1391_v4 }
 0x41a   :  { %v737_v11 = vmul.f32 %v736_v38, %v1369_v17  ;;  %v741_v13 = vmul.f32 %v736_v38, %v1398_v12  ;;  %v742_v18 = vmul.f32 %v736_v38, %v1405_v27  ;;  %v743_v19 = vmul.f32 %v736_v38, %v1412_v33 }
 0x41b   :  { %v760_v30 = vrot.slane %v753_v29, %v752_v24  ;;  %v744_v28 = vmul.f32 %v736_v38, %v1419_v39 }
 0x41d   :  { %761 = vrot.lane.b32.xlu0 %v760_v30, %s1114_s24 }
 0x48f   :  { %v762_v32 = vpop.permute.xlu0 %761 }
 0x490   :  { %v764_v34 = vsub.f32 %v565_v31, %v762_v32 }
 0x492   :  { %v769_v49 = vrot.slane %v764_v34, %v1354_v25  ;;  %v789_v25 = vrot.slane %v653_v43, 7 }
 0x494   :  { %770 = vrot.lane.b32.xlu1 %v769_v49, %s1112_s4  ;;  %v839_v54 = vsel %vm793_vm4, %v789_v25, %v652_v52  ;;  %v791_v21 = vsel %vm790_vm9, %v789_v25, %v652_v52 }
 0x495   :  { %v840_v16 = vsel %vm796_vm5, %v792_v48, %v839_v54  ;;  %v794_v0 = vsel %vm793_vm4, %v792_v48, %v791_v21 }
 0x496   :  { %v841_v20 = vsel %vm799_vm6, %v795_v51, %v840_v16  ;;  %v797_v60 = vsel %vm796_vm5, %v795_v51, %v794_v0 }
 0x497   :  { %v842_v59 = vsel %vm802_vm7, %v798_v57, %v841_v20  ;;  %v800_v61 = vsel %vm799_vm6, %v798_v57, %v797_v60 }
 0x498   :  { %v843_v7 = vsel %vm805_vm8, %v801_v15, %v842_v59  ;;  %v803_v3 = vsel %vm802_vm7, %v801_v15, %v800_v61 }
 0x499   :  { %v844_v2 = vsel %vm808_vm11, %v804_v58, %v843_v7  ;;  %v806_v8 = vsel %vm805_vm8, %v804_v58, %v803_v3 }
 0x49a   :  { %849 = vst.msk [vmem:[#allocation8 + $0x7] sm:$0xfe] %vm848_vm10, %v844_v2  ;;  %v809_v14 = vsel %vm808_vm11, %v807_v62, %v806_v8 }
 0x49b   :  { %811 = vst.msk [vmem:[#allocation8] sm:$0xff] %vm303_vm1, %v809_v14 }
 0x506   :  { %v771_v9 = vpop.permute.xlu1 %770 }
 0x507   :  { %v774_v23 = vadd.f32 %v771_v9, %v738_v1  ;;  %v775_v24 = vadd.f32 %v771_v9, %v739_v5  ;;  %v776_v26 = vadd.f32 %v771_v9, %v740_v6  ;;  %v777_v4 = vadd.f32 %v771_v9, %v741_v13 }
 0x508   :  { %v773_v29 = vadd.f32 %v771_v9, %v737_v11  ;;  %v778_v30 = vadd.f32 %v771_v9, %v742_v18  ;;  %v779_v12 = vadd.f32 %v771_v9, %v743_v19  ;;  %v780_v49 = vadd.f32 %v771_v9, %v744_v28 }
 0x509   :  { %v820_v17 = vrot.slane %v774_v23, 7  ;;  %v822_v31 = vrot.slane %v775_v24, 6  ;;  %v824_v32 = vrot.slane %v776_v26, 5  ;;  %v826_v35 = vrot.slane %v777_v4, 4 }
 0x50a   :  { %v828_v33 = vrot.slane %v778_v30, 3  ;;  %v830_v38 = vrot.slane %v779_v12, 2  ;;  %v832_v63 = vrot.slane %v780_v49, 1 }
 0x50b   :  { %v852_v34 = vsel %vm793_vm4, %v820_v17, %v773_v29  ;;  %v821_v27 = vsel %vm790_vm9, %v820_v17, %v773_v29 }
 0x50c   :  { %v853_v10 = vsel %vm796_vm5, %v822_v31, %v852_v34  ;;  %v823_v36 = vsel %vm793_vm4, %v822_v31, %v821_v27 }
 0x50d   :  { %v854_v37 = vsel %vm799_vm6, %v824_v32, %v853_v10  ;;  %v825_v39 = vsel %vm796_vm5, %v824_v32, %v823_v36 }
 0x50e   :  { %v855_v40 = vsel %vm802_vm7, %v826_v35, %v854_v37  ;;  %v827_v41 = vsel %vm799_vm6, %v826_v35, %v825_v39 }
 0x50f   :  { %v856_v42 = vsel %vm805_vm8, %v828_v33, %v855_v40  ;;  %v829_v43 = vsel %vm802_vm7, %v828_v33, %v827_v41 }
 0x510   :  { %v857_v44 = vsel %vm808_vm11, %v830_v38, %v856_v42  ;;  %v831_v45 = vsel %vm805_vm8, %v830_v38, %v829_v43 }
 0x511   :  { %858 = vrot.lane.b32.xlu0 %v857_v44, %s1114_s24  ;;  %v833_v52 = vsel %vm808_vm11, %v832_v63, %v831_v45 }
 0x512   :  { %834 = vrot.lane.b32.xlu1 %v833_v52, %s1114_s24 }
 0x516   :  { %860 = vrot.lane.b32.xlu1 %v832_v63, %s1114_s24 }
 0x583   :  { %v859_v46 = vpop.permute.xlu0 %858 }
 0x584   :  { %865 = vst.msk [vmem:[#allocation8 + $0x7] sm:$0xfe] %vm864_vm13, %v859_v46  ;;  %v835_v25 = vpop.permute.xlu1 %834 }
 0x585   :  { %838 = vst.msk [vmem:[#allocation8] sm:$0xff] %vm837_vm14, %v835_v25 }
 0x588   :  { %v861_v47 = vpop.permute.xlu1 %860 }
 0x589   :  { %867 = vst.msk [vmem:[#allocation8 + $0xf] sm:$0x1] %vm866_vm15, %v861_v47 }
 0x58a   :  { %1084 = shalt.err (!%p1081_p5)
}
 0x58b   :  { %s1085_s7 = scalar_lea.hbm %s1504_s6, 256 }
 0x58c   :  { %p1086_p6 = scmp.ne.s32.totalorder %s1504_s6, %s1085_s7  ;;  %p1089_p7 = scmp.lt.u32.totalorder %s1085_s7, %s1504_s6 }
 0x58e   :  { %p1091_p8 = pnand %p1089_p7, %p1086_p6 }
 0x590   :  { %1094 = shalt.err (!%p1091_p8)
}
 0x591   :  { %s1116_s11 = smov 128   ;;  %s1117_s12 = smov 8  }
 0x592   :  { %879 = dma.vmem_to_hbm [thread:$0]  %s874_s27, 256, %s1504_s6, [#allocation9], %s1116_s11, %s1116_s11, %s1117_s12  }
 0x593   :  { %1099 = dma.done.wait [#allocation9], 256  }
 0x594   :  { %1100 = vsyncadd [#allocation9], 4294967040 }
 0x595   :  { %883 = vsyncpa [#allocation9], 1 }

</bundles_post_ra>
